<compile_context>
chip_gen: v7x
topology: tpu7x:2x2x1
jax: 0.10.0
libtpu: 0.0.40
codegen_flags: <defaults>
</compile_context>

<pallas_src>
import jax
import jax.numpy as jnp
from jax.experimental import pallas as pl
from jax.experimental.pallas import tpu as pltpu

HIDDEN1 = 400
HIDDEN2 = 300
H1P = 512          # 400 padded to a lane multiple
H2P = 384          # 300 padded to a lane multiple
TM_MAX = 2048      # row-tile upper bound (multiple of 256 for MXU M-granularity)


def _round_up(x, m):
    return (x + m - 1) // m * m


def _choose_tile(M):
    """Row-tile size: as large as possible (amortize per-grid-step overhead,
    reuse MXU weight pushes), but keep >= 2 grid steps when M allows it so the
    two v7x TensorCores both get work, and never exceed round_up(M, 8)."""
    if M <= 8:
        return 8
    half = (M + 1) // 2
    tm = min(TM_MAX, _round_up(half, 256))
    return min(tm, _round_up(M, 8))


def critic_kernel(s_ref, a_ref, w1_ref, b1_ref, w2s_ref, w2a_ref, w3_ref,
                  out_ref):
    # In-kernel bf16 cast of activations (wrapper passes f32 straight through).
    s = s_ref[...].astype(jnp.bfloat16)
    a = a_ref[...].astype(jnp.bfloat16)

    # Layer 1 (MXU, bf16 in / f32 acc): relu(state @ W1 + b1) -> [TM, 512].
    # ReLU is done in bf16 (bit-identical to relu-then-cast) and b1_r[400]=1
    # plants the constant-1 column used to fold b2 into the layer-2 weights.
    h1 = jnp.dot(s, w1_ref[...], preferred_element_type=jnp.float32)
    h1 = jnp.maximum((h1 + b1_ref[...]).astype(jnp.bfloat16), 0)

    # Layer 2: relu(h1 @ W2s + actions @ W2a) -> [TM, 384].
    # The concat is expressed as a sum of two matmuls; b2 rides in W2s row 400
    # (multiplied by h1[:,400]==1) and W2s[400,300]=1 makes h2[:,300]==1 so b3
    # can be folded into w3_r. No broadcast bias-add needed on the VALU.
    h2 = jnp.dot(h1, w2s_ref[...], preferred_element_type=jnp.float32)
    h2 = h2 + jnp.dot(a, w2a_ref[...], preferred_element_type=jnp.float32)
    h2 = jnp.maximum(h2, 0.0)

    # Layer 3 (N=1): VPU multiply + lane reduction; b3 rides in w3_r[0,300].
    # TODO(synk): output kept as [TM, 1] (writeback ~4*M bytes, negligible);
    # a lane-dense output slab was skipped to avoid an extra relayout.
    out_ref[...] = jnp.sum(h2 * w3_ref[...], axis=-1, keepdims=True)


def prepare_params(params):
    """One-time weight prep: transpose to [in, out], zero-pad to lane
    multiples (400->512, 300->384), fold biases into the padded slots, and
    cast matmul weights to bf16."""
    w1, b1 = params["w1"], params["b1"]
    w2, b2 = params["w2"], params["b2"]
    w3, b3 = params["w3"], params["b3"]
    bf = jnp.bfloat16
    f32 = jnp.float32

    # Layer 1: [sd, 512] bf16 weights; f32 bias row with the "1" carrier.
    w1_t = jnp.pad(w1.T, ((0, 0), (0, H1P - HIDDEN1))).astype(bf)
    b1_r = jnp.zeros((1, H1P), f32)
    b1_r = b1_r.at[0, :HIDDEN1].set(b1)
    b1_r = b1_r.at[0, HIDDEN1].set(1.0)          # -> h1[:, 400] == 1

    # Layer 2 split weights: state-part [512, 384] carries b2 (row 400) and
    # the carrier 1.0 (row 400, col 300); action-part [ad, 384].
    w2s = jnp.zeros((H1P, H2P), f32)
    w2s = w2s.at[:HIDDEN1, :HIDDEN2].set(w2[:, :HIDDEN1].T)
    w2s = w2s.at[HIDDEN1, :HIDDEN2].set(b2)      # b2 fold (rounded to bf16)
    w2s = w2s.at[HIDDEN1, HIDDEN2].set(1.0)      # -> h2[:, 300] == 1
    w2s_t = w2s.astype(bf)
    w2a_t = jnp.pad(w2[:, HIDDEN1:].T,
                    ((0, 0), (0, H2P - HIDDEN2))).astype(bf)

    # Layer 3: f32 row vector with b3 folded exactly into column 300.
    w3_r = jnp.zeros((1, H2P), f32)
    w3_r = w3_r.at[0, :HIDDEN2].set(w3[0])
    w3_r = w3_r.at[0, HIDDEN2].set(b3[0])

    return {"w1_t": w1_t, "b1_r": b1_r, "w2s_t": w2s_t, "w2a_t": w2a_t,
            "w3_r": w3_r}


def critic_forward(state, actions, prepped):
    """state: [B, T, state_dim], actions: [B, T, action_dim] -> [B, T, 1]."""
    B, T, sd = state.shape
    _, _, ad = actions.shape
    M = B * T

    TM = _choose_tile(M)
    grid = (pl.cdiv(M, TM),)

    # Reshape only (free metadata op); no wrapper-side pad / bf16 copy.
    s2 = state.reshape(M, sd)
    a2 = actions.reshape(M, ad)

    out = pl.pallas_call(
        critic_kernel,
        out_shape=jax.ShapeDtypeStruct((M, 1), jnp.float32),
        grid=grid,
        in_specs=[
            # Activations: tiled over rows (double-buffered per grid step).
            pl.BlockSpec((TM, sd), lambda i: (i, 0)),
            pl.BlockSpec((TM, ad), lambda i: (i, 0)),
            # Weights / bias row: constant block index -> resident in VMEM.
            pl.BlockSpec((sd, H1P), lambda i: (0, 0)),
            pl.BlockSpec((1, H1P), lambda i: (0, 0)),
            pl.BlockSpec((H1P, H2P), lambda i: (0, 0)),
            pl.BlockSpec((ad, H2P), lambda i: (0, 0)),
            pl.BlockSpec((1, H2P), lambda i: (0, 0)),
        ],
        out_specs=pl.BlockSpec((TM, 1), lambda i: (i, 0)),
        compiler_params=pltpu.CompilerParams(
            dimension_semantics=("parallel",),
            vmem_limit_bytes=48 * 1024 * 1024),
    )(s2, a2, prepped["w1_t"], prepped["b1_r"], prepped["w2s_t"],
      prepped["w2a_t"], prepped["w3_r"])

    return out.reshape(B, T, 1)


def init_params(key, state_dim, action_dim):
    """Deterministic init mimicking nn.Linear default U(-1/sqrt(fan_in), ...)."""
    ks = jax.random.split(key, 6)

    def lin(kw, kb, fan_in, fan_out):
        bound = 1.0 / jnp.sqrt(fan_in)
        w = jax.random.uniform(kw, (fan_out, fan_in), jnp.float32, -bound, bound)
        b = jax.random.uniform(kb, (fan_out,), jnp.float32, -bound, bound)
        return w, b

    w1, b1 = lin(ks[0], ks[1], state_dim, HIDDEN1)
    w2, b2 = lin(ks[2], ks[3], HIDDEN1 + action_dim, HIDDEN2)
    w3, b3 = lin(ks[4], ks[5], HIDDEN2, 1)
    return {"w1": w1, "b1": b1, "w2": w2, "b2": b2, "w3": w3, "b3": b3}


def reference_forward_f32(state, actions, p):
    """Plain-JAX f32 reference mirroring the PyTorch module exactly."""
    q = jax.nn.relu(jnp.einsum("btf,of->bto", state, p["w1"]) + p["b1"])
    cat = jnp.concatenate([q, actions], axis=2)
    q = jax.nn.relu(jnp.einsum("btf,of->bto", cat, p["w2"]) + p["b2"])
    return jnp.einsum("btf,of->bto", q, p["w3"]) + p["b3"]


def reference_forward_bf16(state, actions, p):
    """Reference with the same bf16 casts / f32 accumulation / bias folding
    numerics as the kernel (b2 is folded into the bf16 layer-2 weights)."""
    bf = jnp.bfloat16
    s = state.astype(bf)
    a = actions.astype(bf)
    w1 = p["w1"].astype(bf)
    w2 = p["w2"].astype(bf)
    b2_bf = p["b2"].astype(bf).astype(jnp.float32)
    h1 = (jnp.einsum("btf,of->bto", s, w1,
                     preferred_element_type=jnp.float32) + p["b1"])
    h1b = jnp.maximum(h1.astype(bf), 0)
    h2 = (jnp.einsum("btf,of->bto", h1b, w2[:, :HIDDEN1],
                     preferred_element_type=jnp.float32)
          + jnp.einsum("btf,of->bto", a, w2[:, HIDDEN1:],
                       preferred_element_type=jnp.float32)
          + b2_bf)
    h2 = jnp.maximum(h2, 0.0)
    return jnp.einsum("btf,of->bto", h2, p["w3"]) + p["b3"]


if __name__ == "__main__":
    B, T = 2, 8
    state_dim, action_dim = 16, 4

    key = jax.random.PRNGKey(0)
    k_state, k_act, k_params = jax.random.split(key, 3)

    state = jax.random.normal(k_state, (B, T, state_dim), jnp.float32)
    actions = jax.random.normal(k_act, (B, T, action_dim), jnp.float32)
    params = init_params(k_params, state_dim, action_dim)
    prepped = prepare_params(params)          # one-time weight prep (hoisted)

    fwd = jax.jit(critic_forward)
    out = jax.block_until_ready(fwd(state, actions, prepped))

    ref_bf16 = reference_forward_bf16(state, actions, params)
    ref_f32 = reference_forward_f32(state, actions, params)

    assert out.shape == (B, T, 1), out.shape
    # Tight check vs a reference doing the identical bf16 casts / bias folds.
    assert jnp.allclose(out, ref_bf16, atol=2e-3, rtol=2e-3), \
        f"max abs err vs bf16 ref {jnp.max(jnp.abs(out - ref_bf16))}"
    # Loose semantic check vs the pure-f32 PyTorch-equivalent reference.
    assert jnp.allclose(out, ref_f32, atol=3e-2, rtol=3e-2), \
        f"max abs err vs f32 ref {jnp.max(jnp.abs(out - ref_f32))}"

    print("KERNEL_OK")
</pallas_src>

<mosaic_0001>
module attributes {stable_mosaic.version = 11 : i64} {
  func.func @critic_kernel(%arg0: i32, %arg1: memref<16x16xf32, #tpu.memory_space<vmem>>, %arg2: memref<16x4xf32, #tpu.memory_space<vmem>>, %arg3: memref<16x512xbf16, #tpu.memory_space<vmem>>, %arg4: memref<1x512xf32, #tpu.memory_space<vmem>>, %arg5: memref<512x384xbf16, #tpu.memory_space<vmem>>, %arg6: memref<4x384xbf16, #tpu.memory_space<vmem>>, %arg7: memref<1x384xf32, #tpu.memory_space<vmem>>, %arg8: memref<16x1xf32, #tpu.memory_space<vmem>>) attributes {dimension_semantics = [#tpu.dimension_semantics<parallel>], iteration_bounds = array<i64: 1>, scalar_prefetch = 0 : i64, scratch_operands = 0 : i64, tpu.core_type = #tpu.core_type<tc>, window_params = [{transform_indices = @transform_0, window_bounds = array<i64: 16, 16>}, {transform_indices = @transform_1, window_bounds = array<i64: 16, 4>}, {pipeline_mode = #tpu.pipeline_mode<synchronous>, transform_indices = @transform_2, window_bounds = array<i64: 16, 512>}, {pipeline_mode = #tpu.pipeline_mode<synchronous>, transform_indices = @transform_3, window_bounds = array<i64: 1, 512>}, {pipeline_mode = #tpu.pipeline_mode<synchronous>, transform_indices = @transform_4, window_bounds = array<i64: 512, 384>}, {pipeline_mode = #tpu.pipeline_mode<synchronous>, transform_indices = @transform_5, window_bounds = array<i64: 4, 384>}, {pipeline_mode = #tpu.pipeline_mode<synchronous>, transform_indices = @transform_6, window_bounds = array<i64: 1, 384>}, {transform_indices = @transform_7, window_bounds = array<i64: 16, 1>}]} {
    %c0 = arith.constant 0 : index
    %c0_0 = arith.constant 0 : index
    %0 = vector.load %arg1[%c0, %c0_0] : memref<16x16xf32, #tpu.memory_space<vmem>>, vector<16x16xf32>
    %1 = arith.truncf %0 : vector<16x16xf32> to vector<16x16xbf16>
    %c0_1 = arith.constant 0 : index
    %c0_2 = arith.constant 0 : index
    %2 = vector.load %arg2[%c0_1, %c0_2] : memref<16x4xf32, #tpu.memory_space<vmem>>, vector<16x4xf32>
    %3 = arith.truncf %2 : vector<16x4xf32> to vector<16x4xbf16>
    %c0_3 = arith.constant 0 : index
    %c0_4 = arith.constant 0 : index
    %4 = vector.load %arg3[%c0_3, %c0_4] : memref<16x512xbf16, #tpu.memory_space<vmem>>, vector<16x512xbf16>
    %cst = arith.constant dense<0.000000e+00> : vector<16x512xf32>
    %5 = tpu.matmul %1, %4, %cst {dimension_numbers = #tpu.dot_dimension_numbers<[1], [0], [0], [1], [0, 0, 1, 1], [], []>} : vector<16x16xbf16>, vector<16x512xbf16>, vector<16x512xf32> -> vector<16x512xf32>
    %c0_5 = arith.constant 0 : index
    %c0_6 = arith.constant 0 : index
    %6 = vector.load %arg4[%c0_5, %c0_6] : memref<1x512xf32, #tpu.memory_space<vmem>>, vector<1x512xf32>
    %7 = vector.broadcast %6 : vector<1x512xf32> to vector<16x512xf32>
    %8 = arith.addf %5, %7 : vector<16x512xf32>
    %9 = arith.truncf %8 : vector<16x512xf32> to vector<16x512xbf16>
    %cst_7 = arith.constant 0.000000e+00 : bf16
    %10 = vector.broadcast %cst_7 : bf16 to vector<16x512xbf16>
    %11 = arith.maximumf %9, %10 : vector<16x512xbf16>
    %c0_8 = arith.constant 0 : index
    %c0_9 = arith.constant 0 : index
    %12 = vector.load %arg5[%c0_8, %c0_9] : memref<512x384xbf16, #tpu.memory_space<vmem>>, vector<512x384xbf16>
    %cst_10 = arith.constant dense<0.000000e+00> : vector<16x384xf32>
    %13 = tpu.matmul %11, %12, %cst_10 {dimension_numbers = #tpu.dot_dimension_numbers<[1], [0], [0], [1], [0, 0, 1, 1], [], []>} : vector<16x512xbf16>, vector<512x384xbf16>, vector<16x384xf32> -> vector<16x384xf32>
    %c0_11 = arith.constant 0 : index
    %c0_12 = arith.constant 0 : index
    %14 = vector.load %arg6[%c0_11, %c0_12] : memref<4x384xbf16, #tpu.memory_space<vmem>>, vector<4x384xbf16>
    %cst_13 = arith.constant dense<0.000000e+00> : vector<16x384xf32>
    %15 = tpu.matmul %3, %14, %cst_13 {dimension_numbers = #tpu.dot_dimension_numbers<[1], [0], [0], [1], [0, 0, 1, 1], [], []>} : vector<16x4xbf16>, vector<4x384xbf16>, vector<16x384xf32> -> vector<16x384xf32>
    %16 = arith.addf %13, %15 : vector<16x384xf32>
    %cst_14 = arith.constant 0.000000e+00 : f32
    %17 = vector.broadcast %cst_14 : f32 to vector<16x384xf32>
    %18 = arith.maximumf %16, %17 : vector<16x384xf32>
    %c0_15 = arith.constant 0 : index
    %c0_16 = arith.constant 0 : index
    %19 = vector.load %arg7[%c0_15, %c0_16] : memref<1x384xf32, #tpu.memory_space<vmem>>, vector<1x384xf32>
    %20 = vector.broadcast %19 : vector<1x384xf32> to vector<16x384xf32>
    %21 = arith.mulf %18, %20 : vector<16x384xf32>
    %cst_17 = arith.constant dense<0.000000e+00> : vector<16xf32>
    %22 = vector.multi_reduction <add>, %21, %cst_17 [1] : vector<16x384xf32> to vector<16xf32>
    %23 = vector.shape_cast %22 : vector<16xf32> to vector<16x1xf32>
    %c0_18 = arith.constant 0 : index
    %c0_19 = arith.constant 0 : index
    %24 = vector.load %arg8[%c0_18, %c0_19] : memref<16x1xf32, #tpu.memory_space<vmem>>, vector<16x1xf32>
    tpu.vector_store %arg8[%c0_18, %c0_19], %23 {strides = array<i32>} : memref<16x1xf32, #tpu.memory_space<vmem>>, vector<16x1xf32>,
    return
  }
  func.func @transform_0(%arg0: i32) -> (i32, i32) {
    %c0_i32 = arith.constant 0 : i32
    %c0_i32_0 = arith.constant 0 : i32
    return %arg0, %c0_i32 : i32, i32
  }
  func.func @transform_1(%arg0: i32) -> (i32, i32) {
    %c0_i32 = arith.constant 0 : i32
    %c0_i32_0 = arith.constant 0 : i32
    return %arg0, %c0_i32 : i32, i32
  }
  func.func @transform_2(%arg0: i32) -> (i32, i32) {
    %c0_i32 = arith.constant 0 : i32
    %c0_i32_0 = arith.constant 0 : i32
    %c0_i32_1 = arith.constant 0 : i32
    return %c0_i32, %c0_i32_0 : i32, i32
  }
  func.func @transform_3(%arg0: i32) -> (i32, i32) {
    %c0_i32 = arith.constant 0 : i32
    %c0_i32_0 = arith.constant 0 : i32
    %c0_i32_1 = arith.constant 0 : i32
    return %c0_i32, %c0_i32_0 : i32, i32
  }
  func.func @transform_4(%arg0: i32) -> (i32, i32) {
    %c0_i32 = arith.constant 0 : i32
    %c0_i32_0 = arith.constant 0 : i32
    %c0_i32_1 = arith.constant 0 : i32
    return %c0_i32, %c0_i32_0 : i32, i32
  }
  func.func @transform_5(%arg0: i32) -> (i32, i32) {
    %c0_i32 = arith.constant 0 : i32
    %c0_i32_0 = arith.constant 0 : i32
    %c0_i32_1 = arith.constant 0 : i32
    return %c0_i32, %c0_i32_0 : i32, i32
  }
  func.func @transform_6(%arg0: i32) -> (i32, i32) {
    %c0_i32 = arith.constant 0 : i32
    %c0_i32_0 = arith.constant 0 : i32
    %c0_i32_1 = arith.constant 0 : i32
    return %c0_i32, %c0_i32_0 : i32, i32
  }
  func.func @transform_7(%arg0: i32) -> (i32, i32) {
    %c0_i32 = arith.constant 0 : i32
    %c0_i32_0 = arith.constant 0 : i32
    return %arg0, %c0_i32 : i32, i32
  }
}

</mosaic_0001>

<bundles_post_ra>
// kernel: critic_forward.1
= control target key start
LH: loop header
LB: loop body
LE: loop exit
PB: predicated region body
PF: predicated region fallthrough
CT: control target
= control target key end

     0   :  { %12 = vsyncpa [#allocation3], 0  ;;  %s1697_s0 = inlined_call_operand.hbm [shape: f32[16,16], index: 0, kind: input, shape index: {}]   ;;  %s1698_s1 = inlined_call_operand.vmem [shape: f32[16,4], index: 1, kind: input, shape index: {}]   ;;  %s1699_s2 = inlined_call_operand.vmem [shape: bf16[16,512], index: 2, kind: input, shape index: {}]   ;;  %s1700_s3 = inlined_call_operand.vmem [shape: f32[1,512], index: 3, kind: input, shape index: {}]   ;;  %s1701_s4 = inlined_call_operand.hbm [shape: bf16[512,384], index: 4, kind: input, shape index: {}]   ;;  %s1702_s5 = inlined_call_operand.vmem [shape: bf16[4,384], index: 5, kind: input, shape index: {}]   ;;  %s1703_s6 = inlined_call_operand.vmem [shape: f32[1,384], index: 6, kind: input, shape index: {}]   ;;  %s1704_s7 = inlined_call_operand.vmem [shape: f32[16,1], index: 7, kind: output, shape index: {}]  }
   0x1   :  { %13 = vsyncpa [#allocation5], 0  ;;  %s1533_s24 = smov [#allocation2]   ;;  %s1485_s28 = scalar_lea.hbm %s1697_s0, 256 }
   0x2   :  { %s19_s25 = sshll.u32 %s1533_s24, 4  ;;  %p1486_p0 = scmp.ne.s32.totalorder %s1697_s0, %s1485_s28  ;;  %s20_s25 = int_to_ptr.vmem [resolvable:$true] %s19_s25 }
   0x3   :  { %p1489_p1 = scmp.lt.u32.totalorder %s1485_s28, %s1697_s0 }
   0x5   :  { %p1491_p2 = pnand %p1489_p1, %p1486_p0 }
   0x7   :  { %1494 = shalt.err (!%p1491_p2)
}
   0x8   :  { %s1495_s10 = scalar_lea.vmem %s20_s25, 256  ;;  %p1500_p4 = scmp.lt.s32.totalorder %s20_s25, %s20_s25 }
   0x9   :  { %p1496_p3 = scmp.ne.s32.totalorder %s20_s25, %s1495_s10  ;;  %p1501_p5 = scmp.lt.s32.totalorder %s1495_s10, %s1495_s10 }
   0xb   :  { %p1502_p6 = por %p1501_p5, %p1500_p4 }
   0xd   :  { %p1503_p7 = pnand %p1502_p6, %p1496_p3 }
   0xf   :  { %1506 = shalt.err (!%p1503_p7)
}
  0x10   :  { %s1534_s11 = smov 128   ;;  %s1535_s12 = smov 8  }
  0x11   :  { %25 = dma.hbm_to_vmem [thread:$0]  %s1697_s0, 256, %s20_s25, [#allocation3], %s1534_s11, %s1534_s11, %s1535_s12  }
  0x12   :  { %s1536_s15 = smov [#allocation4]   ;;  %s1507_s19 = scalar_lea.hbm %s1701_s4, 12288 }
  0x13   :  { %s37_s16 = sshll.u32 %s1536_s15, 4  ;;  %p1508_p8 = scmp.ne.s32.totalorder %s1701_s4, %s1507_s19  ;;  %s38_s16 = int_to_ptr.vmem [resolvable:$true] %s37_s16 }
  0x14   :  { %p1511_p9 = scmp.lt.u32.totalorder %s1507_s19, %s1701_s4 }
  0x16   :  { %p1513_p10 = pnand %p1511_p9, %p1508_p8 }
  0x18   :  { %1516 = shalt.err (!%p1513_p10)
}
  0x19   :  { %s1517_s24 = scalar_lea.vmem %s38_s16, 12288  ;;  %p1522_p12 = scmp.lt.s32.totalorder %s38_s16, %s38_s16 }
  0x1a   :  { %p1518_p11 = scmp.ne.s32.totalorder %s38_s16, %s1517_s24  ;;  %p1523_p13 = scmp.lt.s32.totalorder %s1517_s24, %s1517_s24 }
  0x1c   :  { %p1524_p0 = por %p1523_p13, %p1522_p12 }
  0x1e   :  { %p1525_p1 = pnand %p1524_p0, %p1518_p11 }
  0x20   :  { %1528 = shalt.err (!%p1525_p1)
}
  0x21   :  { %s1537_s0 = smov 192   ;;  %s1538_s25 = smov 12  }
  0x22   :  { %43 = dma.hbm_to_vmem [thread:$0]  %s1701_s4, 12288, %s38_s16, [#allocation5], %s1537_s0, %s1537_s0, %s1538_s25  }
  0x23   :  { %1529 = dma.done.wait [#allocation3], 256  }
  0x24   :  { %1530 = vsyncadd [#allocation3], 4294967040 }
  0x25   :  { %1531 = dma.done.wait [#allocation5], 12288  }
  0x26   :  { %1532 = vsyncadd [#allocation5], 4294955008  ;;  %v1539_v0 = vmov 0   ;;  %v1350_v1 = vld [vmem:[%s1699_s2 + $0x4] ss:$16 sps:$4 sm:$0xff]   ;;  %v67_v2 = vlaneseq  ;;  %v56_v7 = vld [vmem:[#allocation2 + $0x8] sm:$0xff] }
  0x27   :  { %143 = vmatprep.mubr.bf16.mxu1 %v1539_v0  ;;  %v1540_v3 = vmov 1983009808   ;;  %v1352_v5 = vld [vmem:[%s1699_s2] ss:$16 sps:$4 sm:$0xff]   ;;  %111 = vmatprep.subr.bf16.mxu1 %v1350_v1  ;;  %v1353_v9 = vld [vmem:[%s1699_s2 + $0x8] ss:$16 sps:$4 sm:$0xff]  }
  0x28   :  { %v337_v4 = vunpack.c.l.s4 %v1540_v3  ;;  %v55_v6 = vld [vmem:[#allocation2] sm:$0xff]  ;;  %112 = vmatpush1.bf16.msra.mxu1 %v1352_v5  ;;  %vm107_vm0 = vcmask 130048   ;;  %v1355_v10 = vld [vmem:[%s1699_s2 + $0xc] ss:$16 sps:$4 sm:$0xff]   ;;  %v1620_v13 = vshrl.u32 %v67_v2, 7  ;;  %vm355_vm1 = vcmask 1041408  }
  0x29   :  { %v57_v8 = vpack.c.bf16 %v56_v7, %v55_v6  ;;  %v1356_v11 = vld [vmem:[#allocation4 + $0x4] ss:$12 sps:$4 sm:$0xff]   ;;  %v1358_v12 = vld [vmem:[#allocation4] ss:$12 sps:$4 sm:$0xff]   ;;  %154 = vmatprep.subr.bf16.mxu1 %v1355_v10  ;;  %v1359_v15 = vld [vmem:[#allocation4 + $0x1c] ss:$12 sps:$4 sm:$0xff]  }
  0x2a   :  { %v338_v14 = vunpack.c.0.s8 %v337_v4  ;;  %961 = vmatprep.subr.bf16.mxu0 %v1356_v11  ;;  %v1361_v16 = vld [vmem:[#allocation4 + $0x18] ss:$12 sps:$4 sm:$0xff]   ;;  %v1362_v18 = vld [vmem:[#allocation4 + $0x34] ss:$12 sps:$4 sm:$0xff]   ;;  %v1364_v20 = vld [vmem:[#allocation4 + $0x30] ss:$12 sps:$4 sm:$0xff]  }
  0x2b   :  { %1179 = vmatmul.mubr.msk.bf16.vlgmr.msra.gmra.mrb[0].mxu1 %vm107_vm0, %v57_v8  ;;  %962 = vmatpush1.bf16.msra.mxu0 %v1358_v12  ;;  %v333_v19 = vld [vmem:[%s1702_s5] sm:$0x3f]  ;;  %v1365_v23 = vld [vmem:[#allocation4 + $0x4c] ss:$12 sps:$4 sm:$0xff]   ;;  %vm351_vm2 = vcmask 31744   ;;  %v1541_v32 = vmov 0.0  }
  0x2c   :  { %155 = vmatpush1.bf16.msra.mxu1 %v1353_v9  ;;  %186 = vmatprep.mubr.bf16.mxu1 %v1539_v0  ;;  %v341_v17 = vsub.s32 %v338_v14, %v1620_v13  ;;  %v335_v22 = vcombine.high %v333_v19, %v333_v19  ;;  %v1367_v24 = vld [vmem:[#allocation4 + $0x48] ss:$12 sps:$4 sm:$0xff]   ;;  %v59_v28 = vld [vmem:[%s1698_s1 + $0x8] sm:$0xff]  ;;  %v1368_v30 = vld [vmem:[#allocation4 + $0x64] ss:$12 sps:$4 sm:$0xff]   ;;  %vm1542_vm3 = vmmov 0  }
  0x2d   :  { %963 = vmatprep.subr.bf16.mxu0 %v1359_v15  ;;  %v58_v27 = vld [vmem:[%s1698_s1] sm:$0xff]  ;;  %v1370_v33 = vld [vmem:[#allocation4 + $0x60] ss:$12 sps:$4 sm:$0xff]   ;;  %v1371_v36 = vld [vmem:[#allocation4 + $0x7c] ss:$12 sps:$4 sm:$0xff]   ;;  %v69_v12 = vsub.s32 0, %v1620_v13 }
  0x2e   :  { %v342_v21 = vrot.slane %v333_v19, %v341_v17  ;;  %v349_v29 = vrot.slane %v335_v22, %v341_v17  ;;  %v60_v31 = vpack.c.bf16 %v59_v28, %v58_v27  ;;  %v1383_v35 = vld [vmem:[#allocation4 + $0xc8] ss:$12 sps:$4 sm:$0xff]   ;;  %v1373_v37 = vld [vmem:[#allocation4 + $0x78] ss:$12 sps:$4 sm:$0xff]   ;;  %v1376_v39 = vld [vmem:[#allocation4 + $0x90] ss:$12 sps:$4 sm:$0xff]  }
  0x2f   :  { %964 = vmatpush1.bf16.msra.mxu0 %v1361_v16  ;;  %v1374_v38 = vld [vmem:[#allocation4 + $0x94] ss:$12 sps:$4 sm:$0xff]   ;;  %v1377_v42 = vld [vmem:[#allocation4 + $0xac] ss:$12 sps:$4 sm:$0xff]   ;;  %v1381_v46 = vld [vmem:[#allocation4 + $0xc4] ss:$12 sps:$4 sm:$0xff]  }
  0x30   :  { %965 = vmatprep.subr.bf16.mxu0 %v1362_v18  ;;  %v350_v25 = vcombine.high %v342_v21, %v342_v21  ;;  %v357_v26 = vsel %vm355_vm1, %v342_v21, 0  ;;  %v363_v34 = vsel %vm355_vm1, %v349_v29, 0  ;;  %v1385_v40 = vld [vmem:[#allocation4 + $0x8] ss:$12 sps:$4 sm:$0xff]   ;;  %v1388_v41 = vld [vmem:[#allocation4 + $0xe0] ss:$12 sps:$4 sm:$0xff]  }
  0x31   :  { %v1380_v43 = vld [vmem:[#allocation4 + $0xa8] ss:$12 sps:$4 sm:$0xff]   ;;  %v1390_v44 = vld [vmem:[#allocation4 + $0x20] ss:$12 sps:$4 sm:$0xff]   ;;  %v1393_v45 = vld [vmem:[#allocation4 + $0xf8] ss:$12 sps:$4 sm:$0xff]  }
  0x32   :  { %1181 = vmatprep.subr.msk.bf16.mxu1 %vm355_vm1, %v350_v25  ;;  %v1384_v47 = vld [vmem:[#allocation4 + $0xc0] ss:$12 sps:$4 sm:$0xff]   ;;  %v1395_v48 = vld [vmem:[#allocation4 + $0x38] ss:$12 sps:$4 sm:$0xff]   ;;  %v1386_v49 = vld [vmem:[#allocation4 + $0xdc] ss:$12 sps:$4 sm:$0xff]  }
  0x33   :  { %1180 = vmatmul.mubr.msk.bf16.vlgmr.msra.gmra.mrb[4].mxu1 %vm107_vm0, %v57_v8  ;;  %966 = vmatpush1.bf16.msra.mxu0 %v1364_v20  ;;  %v1398_v50 = vld [vmem:[#allocation4 + $0x110] ss:$12 sps:$4 sm:$0xff]   ;;  %v1389_v52 = vld [vmem:[#allocation4 + $0xd8] ss:$12 sps:$4 sm:$0xff]   ;;  %v1403_v53 = vld [vmem:[#allocation4 + $0x128] ss:$12 sps:$4 sm:$0xff]  }
  0x34   :  { %397 = vmatprep.mubr.bf16.mxu1 %v1539_v0  ;;  %967 = vmatprep.subr.bf16.mxu0 %v1365_v23  ;;  %v1400_v51 = vld [vmem:[#allocation4 + $0x50] ss:$12 sps:$4 sm:$0xff]   ;;  %v1391_v54 = vld [vmem:[#allocation4 + $0xf4] ss:$12 sps:$4 sm:$0xff]   ;;  %v1396_v58 = vld [vmem:[#allocation4 + $0x10c] ss:$12 sps:$4 sm:$0xff]  }
  0x35   :  { %366 = vmatpush1.bf16.msra.mxu1 %v357_v26  ;;  %v1405_v55 = vld [vmem:[#allocation4 + $0x68] ss:$12 sps:$4 sm:$0xff]   ;;  %v1394_v56 = vld [vmem:[#allocation4 + $0xf0] ss:$12 sps:$4 sm:$0xff]   ;;  %v1408_v57 = vld [vmem:[#allocation4 + $0x140] ss:$12 sps:$4 sm:$0xff]  }
  0x36   :  { %1326 = vmatprep.subr.bf16.mxu1 %v1541_v32  ;;  %v1410_v59 = vld [vmem:[#allocation4 + $0x80] ss:$12 sps:$4 sm:$0xff]   ;;  %v1399_v60 = vld [vmem:[#allocation4 + $0x108] ss:$12 sps:$4 sm:$0xff]   ;;  %v1401_v61 = vld [vmem:[#allocation4 + $0x124] ss:$12 sps:$4 sm:$0xff]  }
  0x37   :  { %968 = vmatpush1.bf16.msra.mxu0 %v1367_v24  ;;  %v1404_v62 = vld [vmem:[#allocation4 + $0x120] ss:$12 sps:$4 sm:$0xff]   ;;  %v1406_v63 = vld [vmem:[#allocation4 + $0x13c] ss:$12 sps:$4 sm:$0xff]   ;;  %v1409_v1 = vld [vmem:[#allocation4 + $0x138] ss:$12 sps:$4 sm:$0xff]  }
  0x38   :  { %969 = vmatprep.subr.bf16.mxu0 %v1368_v30  ;;  %v1411_v2 = vld [vmem:[#allocation4 + $0x154] ss:$12 sps:$4 sm:$0xff]   ;;  %v1413_v3 = vld [vmem:[#allocation4 + $0x158] ss:$12 sps:$4 sm:$0xff]   ;;  %v1414_v4 = vld [vmem:[#allocation4 + $0x150] ss:$12 sps:$4 sm:$0xff]  }
  0x39   :  { %v1415_v5 = vld [vmem:[#allocation4 + $0x98] ss:$12 sps:$4 sm:$0xff]   ;;  %v1418_v7 = vld [vmem:[#allocation4 + $0x170] ss:$12 sps:$4 sm:$0xff]   ;;  %v1419_v8 = vld [vmem:[#allocation4 + $0x168] ss:$12 sps:$4 sm:$0xff]  }
  0x3a   :  { %v1416_v6 = vld [vmem:[#allocation4 + $0x16c] ss:$12 sps:$4 sm:$0xff]   ;;  %v1420_v9 = vld [vmem:[#allocation4 + $0xb0] ss:$12 sps:$4 sm:$0xff]   ;;  %v1424_v11 = vld [vmem:[#allocation4 + $0x248] ss:$12 sps:$4 sm:$0xff]  }
  0x3b   :  { %1182 = vmatmul.mubr.msk.bf16.vlgmr.msra.gmra.mrb[8].mxu1 %vm351_vm2, %v60_v31  ;;  %970 = vmatpush1.bf16.msra.mxu0 %v1370_v33  ;;  %v1423_v10 = vld [vmem:[#allocation4 + $0x184] ss:$12 sps:$4 sm:$0xff]   ;;  %v73_v15 = vsub.s32 1, %v1620_v13  ;;  %v77_v20 = vsub.s32 2, %v1620_v13  ;;  %v81_v22 = vsub.s32 3, %v1620_v13  ;;  %vm1166_vm4 = vcmask 7168  }
  0x3c   :  { %1327 = vmatpush3.bf16.msra.mxu1 %v363_v34  ;;  %1328 = vmatprep.mubr.msk.bf16.mxu1 %vm1542_vm3, %v1541_v32  ;;  %v65_v14 = vld [vmem:[%s1700_s3] sm:$0xf]  ;;  %v1421_v33 = vld [vmem:[#allocation4 + $0x180] ss:$12 sps:$4 sm:$0xff]   ;;  %v1425_v34 = vld [vmem:[#allocation4 + $0x188] ss:$12 sps:$4 sm:$0xff]  }
  0x3d   :  { %1282 = vmatprep.subr.bf16.mxu1 %v1383_v35  ;;  %971 = vmatprep.subr.bf16.mxu0 %v1371_v36  ;;  %v70_v16 = vrot.slane %v65_v14, %v69_v12  ;;  %v74_v18 = vrot.slane %v65_v14, %v73_v15  ;;  %v78_v29 = vrot.slane %v65_v14, %v77_v20 }
  0x3f   :  { %972 = vmatpush1.bf16.msra.mxu0 %v1373_v37  ;;  %v1428_v37 = vld [vmem:[#allocation4 + $0x19c] ss:$12 sps:$4 sm:$0xff]  }
  0x40   :  { %973 = vmatprep.subr.bf16.mxu0 %v1374_v38  ;;  %v1429_v38 = vld [vmem:[#allocation4 + $0x260] ss:$12 sps:$4 sm:$0xff]  }
  0x43   :  { %1329 = vmatmul.mubr.msk.bf16.vlgmr.msra.gmra.mrb[12].mxu1 %vm351_vm2, %v60_v31  ;;  %974 = vmatpush1.bf16.msra.mxu0 %v1376_v39  ;;  %v82_v31 = vrot.slane %v65_v14, %v81_v22  ;;  %v1453_v14 = vld [vmem:[#allocation4 + $0x214] ss:$12 sps:$4 sm:$0xff]  }
  0x44   :  { %1283 = vmatpush3.bf16.msra.mxu1 %v1385_v40  ;;  %975 = vmatprep.subr.bf16.mxu0 %v1377_v42  ;;  %v1456_v22 = vld [vmem:[#allocation4 + $0x228] ss:$12 sps:$4 sm:$0xff]  }
  0x45   :  { %1284 = vmatprep.subr.bf16.mxu1 %v1388_v41 }
  0x47   :  { %976 = vmatpush1.bf16.msra.mxu0 %v1380_v43 }
  0x48   :  { %1285 = vmatpush3.bf16.msra.mxu1 %v1390_v44  ;;  %977 = vmatprep.subr.bf16.mxu0 %v1381_v46  ;;  %v1430_v46 = vld [vmem:[#allocation4 + $0x1a0] ss:$12 sps:$4 sm:$0xff]  }
  0x49   :  { %1286 = vmatprep.subr.bf16.mxu1 %v1393_v45  ;;  %v1426_v45 = vld [vmem:[#allocation4 + $0x198] ss:$12 sps:$4 sm:$0xff]  }
  0x4b   :  { %978 = vmatpush1.bf16.msra.mxu0 %v1384_v47 }
  0x4c   :  { %1287 = vmatpush3.bf16.msra.mxu1 %v1395_v48  ;;  %979 = vmatprep.subr.bf16.mxu0 %v1386_v49  ;;  %v1433_v48 = vld [vmem:[#allocation4 + $0x1b4] ss:$12 sps:$4 sm:$0xff]   ;;  %v1434_v49 = vld [vmem:[#allocation4 + $0x278] ss:$12 sps:$4 sm:$0xff]  }
  0x4d   :  { %1288 = vmatprep.subr.bf16.mxu1 %v1398_v50 }
  0x4f   :  { %980 = vmatpush1.bf16.msra.mxu0 %v1389_v52  ;;  %v1431_v52 = vld [vmem:[#allocation4 + $0x1b0] ss:$12 sps:$4 sm:$0xff]  }
  0x50   :  { %1289 = vmatpush3.bf16.msra.mxu1 %v1400_v51  ;;  %981 = vmatprep.subr.bf16.mxu0 %v1391_v54 }
  0x51   :  { %1290 = vmatprep.subr.bf16.mxu1 %v1403_v53  ;;  %v1435_v53 = vld [vmem:[#allocation4 + $0x1b8] ss:$12 sps:$4 sm:$0xff]  }
  0x53   :  { %982 = vmatpush1.bf16.msra.mxu0 %v1394_v56  ;;  %v1438_v56 = vld [vmem:[#allocation4 + $0x1cc] ss:$12 sps:$4 sm:$0xff]  }
  0x54   :  { %1291 = vmatpush3.bf16.msra.mxu1 %v1405_v55  ;;  %983 = vmatprep.subr.bf16.mxu0 %v1396_v58 }
  0x55   :  { %1292 = vmatprep.subr.bf16.mxu1 %v1408_v57  ;;  %v1439_v57 = vld [vmem:[#allocation4 + $0x290] ss:$12 sps:$4 sm:$0xff]  }
  0x57   :  { %984 = vmatpush1.bf16.msra.mxu0 %v1399_v60 }
  0x58   :  { %1293 = vmatpush3.bf16.msra.mxu1 %v1410_v59  ;;  %985 = vmatprep.subr.bf16.mxu0 %v1401_v61  ;;  %v1436_v61 = vld [vmem:[#allocation4 + $0x1c8] ss:$12 sps:$4 sm:$0xff]  }
  0x59   :  { %1294 = vmatprep.subr.bf16.mxu1 %v1413_v3  ;;  %v1445_v3 = vld [vmem:[#allocation4 + $0x1e8] ss:$12 sps:$4 sm:$0xff]  }
  0x5b   :  { %986 = vmatpush1.bf16.msra.mxu0 %v1404_v62  ;;  %v1440_v62 = vld [vmem:[#allocation4 + $0x1d0] ss:$12 sps:$4 sm:$0xff]  }
  0x5c   :  { %987 = vmatprep.subr.bf16.mxu0 %v1406_v63  ;;  %1295 = vmatpush3.bf16.msra.mxu1 %v1415_v5  ;;  %v1443_v63 = vld [vmem:[#allocation4 + $0x1e4] ss:$12 sps:$4 sm:$0xff]   ;;  %v1448_v5 = vld [vmem:[#allocation4 + $0x1fc] ss:$12 sps:$4 sm:$0xff]  }
  0x5d   :  { %1296 = vmatprep.subr.bf16.mxu1 %v1418_v7 }
  0x5f   :  { %988 = vmatpush1.bf16.msra.mxu0 %v1409_v1  ;;  %v1444_v1 = vld [vmem:[#allocation4 + $0x2a8] ss:$12 sps:$4 sm:$0xff]  }
  0x60   :  { %989 = vmatprep.subr.bf16.mxu0 %v1411_v2  ;;  %1297 = vmatpush3.bf16.msra.mxu1 %v1420_v9  ;;  %v1441_v2 = vld [vmem:[#allocation4 + $0x1e0] ss:$12 sps:$4 sm:$0xff]  }
  0x61   :  { %1304 = vmatprep.subr.bf16.mxu1 %v1424_v11  ;;  %v1450_v11 = vld [vmem:[#allocation4 + $0x200] ss:$12 sps:$4 sm:$0xff]  }
  0x63   :  { %990 = vmatpush1.bf16.msra.mxu0 %v1414_v4 }
  0x64   :  { %991 = vmatprep.subr.bf16.mxu0 %v1416_v6  ;;  %v1449_v6 = vld [vmem:[#allocation4 + $0x2c0] ss:$12 sps:$4 sm:$0xff]  }
  0x67   :  { %992 = vmatpush1.bf16.msra.mxu0 %v1419_v8 }
  0x68   :  { %1004 = vmatprep.subr.bf16.mxu0 %v1423_v10  ;;  %v1446_v10 = vld [vmem:[#allocation4 + $0x1f8] ss:$12 sps:$4 sm:$0xff]  }
  0xfe   :  { %v145_v17 = vpop.f32.mrb[0].mxu1 }
  0xff   :  { %v147_v19 = vpop.f32.mrb[1].mxu1  ;;  %v146_v23 = vadd.f32 %v145_v17, %v70_v16  ;;  %v1451_v17 = vld [vmem:[#allocation4 + $0x210] ss:$12 sps:$4 sm:$0xff]  }
 0x100   :  { %v149_v21 = vpop.f32.mrb[2].mxu1  ;;  %v148_v26 = vadd.f32 %v147_v19, %v74_v18  ;;  %v1458_v19 = vld [vmem:[#allocation4 + $0x22c] ss:$12 sps:$4 sm:$0xff]  }
 0x101   :  { %v150_v24 = vadd.f32 %v149_v21, %v70_v16  ;;  %v151_v25 = vpop.f32.mrb[3].mxu1  ;;  %v1454_v16 = vld [vmem:[#allocation4 + $0x2d8] ss:$12 sps:$4 sm:$0xff]   ;;  %v1459_v21 = vld [vmem:[#allocation4 + $0x2f0] ss:$12 sps:$4 sm:$0xff]  }
 0x102   :  { %v152_v27 = vadd.f32 %v151_v25, %v74_v18  ;;  %v1455_v18 = vld [vmem:[#allocation4 + $0x218] ss:$12 sps:$4 sm:$0xff]  }
 0x103   :  { %v197_v28 = vpack.c.bf16 %v150_v24, %v146_v23  ;;  %v1460_v23 = vld [vmem:[#allocation4 + $0x230] ss:$12 sps:$4 sm:$0xff]  }
 0x104   :  { %v198_v30 = vpack.c.bf16 %v152_v27, %v148_v26  ;;  %v1463_v24 = vld [vmem:[#allocation4 + $0x244] ss:$12 sps:$4 sm:$0xff]   ;;  %v1461_v26 = vld [vmem:[#allocation4 + $0x240] ss:$12 sps:$4 sm:$0xff]   ;;  %v1466_v27 = vld [vmem:[#allocation4 + $0x25c] ss:$12 sps:$4 sm:$0xff]  }
 0x105   :  { %v201_v36 = vmax.bf16 %v1539_v0, %v197_v28  ;;  %v1464_v28 = vld [vmem:[#allocation4 + $0x258] ss:$12 sps:$4 sm:$0xff]  }
 0x106   :  { %v202_v32 = vmax.bf16 %v1539_v0, %v198_v30  ;;  %v188_v35 = vpop.f32.mrb[4].mxu1  ;;  %v1467_v30 = vld [vmem:[#allocation4 + $0x270] ss:$12 sps:$4 sm:$0xff]  }
 0x107   :  { %v1656_v39 = vadd.f32 %v188_v35, %v78_v29  ;;  %v190_v40 = vpop.f32.mrb[5].mxu1  ;;  %v1476_v35 = vld [vmem:[#allocation4 + $0x2b8] ss:$12 sps:$4 sm:$0xff]  }
 0x108   :  { %993 = vmatprep.mubr.bf16.mxu0 %v202_v32  ;;  %1079 = vmatprep.mubr.bf16.mxu1 %v202_v32  ;;  %v191_v41 = vadd.f32 %v190_v40, %v82_v31  ;;  %v192_v42 = vpop.f32.mrb[6].mxu1  ;;  %v1470_v32 = vld [vmem:[#allocation4 + $0x288] ss:$12 sps:$4 sm:$0xff]  }
 0x109   :  { %994 = vmatmul.mubr.bf16.vlgmr.msra.gmra.mrb[0].mxu0 %v201_v36  ;;  %1080 = vmatmul.mubr.bf16.vlgmr.msra.gmra.mrb[16].mxu1 %v201_v36  ;;  %v1658_v43 = vadd.f32 %v192_v42, %v78_v29  ;;  %v194_v44 = vpop.f32.mrb[7].mxu1  ;;  %v1469_v29 = vld [vmem:[#allocation4 + $0x274] ss:$12 sps:$4 sm:$0xff]  }
 0x10a   :  { %1005 = vmatpush1.bf16.msra.mxu0 %v1421_v33  ;;  %1305 = vmatpush3.bf16.msra.mxu1 %v1425_v34  ;;  %v195_v47 = vadd.f32 %v194_v44, %v82_v31  ;;  %v1472_v31 = vld [vmem:[#allocation4 + $0x28c] ss:$12 sps:$4 sm:$0xff]   ;;  %v1475_v33 = vld [vmem:[#allocation4 + $0x2a4] ss:$12 sps:$4 sm:$0xff]   ;;  %v1478_v34 = vld [vmem:[#allocation4 + $0x2bc] ss:$12 sps:$4 sm:$0xff]  }
 0x10b   :  { %1006 = vmatprep.subr.bf16.mxu0 %v1428_v37  ;;  %1306 = vmatprep.subr.bf16.mxu1 %v1429_v38  ;;  %v199_v50 = vpack.c.bf16 %v1658_v43, %v1656_v39  ;;  %v1481_v36 = vld [vmem:[#allocation4 + $0x2d4] ss:$12 sps:$4 sm:$0xff]   ;;  %v1479_v37 = vld [vmem:[#allocation4 + $0x2d0] ss:$12 sps:$4 sm:$0xff]   ;;  %v1484_v38 = vld [vmem:[#allocation4 + $0x2ec] ss:$12 sps:$4 sm:$0xff]  }
 0x10c   :  { %v200_v51 = vpack.c.bf16 %v195_v47, %v191_v41  ;;  %v1482_v39 = vld [vmem:[#allocation4 + $0x2e8] ss:$12 sps:$4 sm:$0xff]  }
 0x10d   :  { %v203_v25 = vmax.bf16 %v1539_v0, %v199_v50 }
 0x10e   :  { %1007 = vmatpush1.bf16.msra.mxu0 %v1426_v45  ;;  %1307 = vmatpush3.bf16.msra.mxu1 %v1430_v46  ;;  %v204_v54 = vmax.bf16 %v1539_v0, %v200_v51  ;;  %v1663_v55 = vpop.f32.mrb[8].mxu1  ;;  %v1473_v0 = vld [vmem:[#allocation4 + $0x2a0] ss:$12 sps:$4 sm:$0xff]  }
 0x10f   :  { %1008 = vmatprep.subr.bf16.mxu0 %v1433_v48  ;;  %1308 = vmatprep.subr.bf16.mxu1 %v1434_v49  ;;  %v1665_v58 = vpop.f32.mrb[9].mxu1 }
 0x110   :  { %1120 = vmatprep.mubr.bf16.mxu1 %v204_v54  ;;  %1036 = vmatprep.mubr.bf16.mxu0 %v204_v54  ;;  %v1667_v59 = vpop.f32.mrb[10].mxu1 }
 0x111   :  { %v1669_v60 = vpop.f32.mrb[11].mxu1 }
 0x112   :  { %1009 = vmatpush1.bf16.msra.mxu0 %v1431_v52  ;;  %1309 = vmatpush3.bf16.msra.mxu1 %v1435_v53 }
 0x113   :  { %1010 = vmatprep.subr.bf16.mxu0 %v1438_v56  ;;  %1310 = vmatprep.subr.bf16.mxu1 %v1439_v57 }
 0x116   :  { %1011 = vmatpush1.bf16.msra.mxu0 %v1436_v61  ;;  %1311 = vmatpush3.bf16.msra.mxu1 %v1440_v62  ;;  %v1671_v4 = vpop.f32.mrb[12].mxu1  ;;  %v1135_v61 = vld [vmem:[%s1703_s6] sm:$0x7] }
 0x117   :  { %1012 = vmatprep.subr.bf16.mxu0 %v1443_v63  ;;  %1312 = vmatprep.subr.bf16.mxu1 %v1444_v1  ;;  %v1330_v7 = vpop.f32.mrb[13].mxu1  ;;  %v1140_v63 = vrot.slane %v1135_v61, %v69_v12 }
 0x118   :  { %v1673_v8 = vpop.f32.mrb[14].mxu1 }
 0x119   :  { %v1331_v9 = vpop.f32.mrb[15].mxu1 }
 0x11a   :  { %1013 = vmatpush1.bf16.msra.mxu0 %v1441_v2  ;;  %1313 = vmatpush3.bf16.msra.mxu1 %v1445_v3  ;;  %v1144_v3 = vrot.slane %v1135_v61, %v73_v15 }
 0x11b   :  { %1014 = vmatprep.subr.bf16.mxu0 %v1448_v5  ;;  %1314 = vmatprep.subr.bf16.mxu1 %v1449_v6 }
 0x11e   :  { %1015 = vmatpush1.bf16.msra.mxu0 %v1446_v10  ;;  %1315 = vmatpush3.bf16.msra.mxu1 %v1450_v11 }
 0x11f   :  { %1016 = vmatprep.subr.bf16.mxu0 %v1453_v14  ;;  %1316 = vmatprep.subr.bf16.mxu1 %v1454_v16 }
 0x122   :  { %1017 = vmatpush1.bf16.msra.mxu0 %v1451_v17  ;;  %1317 = vmatpush3.bf16.msra.mxu1 %v1455_v18 }
 0x123   :  { %1018 = vmatprep.subr.bf16.mxu0 %v1458_v19  ;;  %1318 = vmatprep.subr.bf16.mxu1 %v1459_v21 }
 0x126   :  { %1019 = vmatpush1.bf16.msra.mxu0 %v1456_v22  ;;  %1319 = vmatpush3.bf16.msra.mxu1 %v1460_v23 }
 0x127   :  { %1020 = vmatprep.subr.bf16.mxu0 %v1463_v24 }
 0x129   :  { %1121 = vmatmul.mubr.bf16.vlgmr.msra.gmra.mrb[20].mxu1 %v203_v25 }
 0x12a   :  { %1021 = vmatpush1.bf16.msra.mxu0 %v1461_v26 }
 0x12b   :  { %1022 = vmatprep.subr.bf16.mxu0 %v1466_v27 }
 0x12e   :  { %1023 = vmatpush1.bf16.msra.mxu0 %v1464_v28 }
 0x12f   :  { %1024 = vmatprep.subr.bf16.mxu0 %v1469_v29 }
 0x132   :  { %1025 = vmatpush1.bf16.msra.mxu0 %v1467_v30 }
 0x133   :  { %1026 = vmatprep.subr.bf16.mxu0 %v1472_v31 }
 0x136   :  { %1027 = vmatpush1.bf16.msra.mxu0 %v1470_v32 }
 0x137   :  { %1028 = vmatprep.subr.bf16.mxu0 %v1475_v33 }
 0x13a   :  { %1029 = vmatpush1.bf16.msra.mxu0 %v1473_v0 }
 0x13b   :  { %1030 = vmatprep.subr.bf16.mxu0 %v1478_v34 }
 0x13e   :  { %1031 = vmatpush1.bf16.msra.mxu0 %v1476_v35 }
 0x13f   :  { %1032 = vmatprep.subr.bf16.mxu0 %v1481_v36 }
 0x142   :  { %1033 = vmatpush1.bf16.msra.mxu0 %v1479_v37 }
 0x143   :  { %1034 = vmatprep.subr.bf16.mxu0 %v1484_v38 }
 0x146   :  { %1035 = vmatpush1.bf16.msra.mxu0 %v1482_v39 }
 0x149   :  { %1037 = vmatmul.mubr.bf16.vlgmr.msra.gmra.mrb[0].mxu0 %v203_v25 }
 0x1dc   :  { %v1298_v40 = vpop.f32.mrb[16].mxu1 }
 0x1dd   :  { %v1299_v41 = vpop.f32.mrb[17].mxu1 }
 0x1de   :  { %v1300_v42 = vadd.f32 %v1299_v41, %v1298_v40  ;;  %v1301_v43 = vpop.f32.mrb[18].mxu1 }
 0x1df   :  { %v1302_v44 = vpop.f32.mrb[19].mxu1 }
 0x1e0   :  { %v1082_v45 = vadd.f32 %v1300_v42, %v1671_v4  ;;  %v1303_v46 = vadd.f32 %v1302_v44, %v1301_v43 }
 0x1e2   :  { %v1085_v47 = vadd.f32 %v1303_v46, %v1673_v8 }
 0x1fc   :  { %v1320_v48 = vpop.f32.mrb[20].mxu1 }
 0x1fd   :  { %v1321_v49 = vpop.f32.mrb[21].mxu1 }
 0x1fe   :  { %v1322_v50 = vadd.f32 %v1321_v49, %v1320_v48  ;;  %v1323_v51 = vpop.f32.mrb[22].mxu1 }
 0x1ff   :  { %v1324_v52 = vpop.f32.mrb[23].mxu1 }
 0x200   :  { %v1123_v53 = vadd.f32 %v1322_v50, %v1082_v45  ;;  %v1325_v54 = vadd.f32 %v1324_v52, %v1323_v51 }
 0x202   :  { %v1126_v56 = vadd.f32 %v1325_v54, %v1085_v47  ;;  %v1131_v8 = vmax.f32 %v1123_v53, 0.0 }
 0x204   :  { %v1134_v14 = vmax.f32 %v1126_v56, 0.0 }
 0x21c   :  { %v1038_v57 = vpop.f32.mrb[0].mxu0 }
 0x21d   :  { %v1332_v62 = vadd.f32 %v1038_v57, %v1663_v55  ;;  %v1040_v1 = vpop.f32.mrb[1].mxu0  ;;  %v1148_v55 = vrot.slane %v1135_v61, %v77_v20 }
 0x21e   :  { %v1333_v2 = vadd.f32 %v1040_v1, %v1665_v58  ;;  %v1042_v4 = vpop.f32.mrb[2].mxu0 }
 0x21f   :  { %v1129_v5 = vmax.f32 %v1332_v62, 0.0  ;;  %v1334_v6 = vadd.f32 %v1042_v4, %v1667_v59  ;;  %v1044_v7 = vpop.f32.mrb[3].mxu0  ;;  %v1154_v15 = vmul.f32 %v1148_v55, %v1131_v8  ;;  %v1157_v22 = vmul.f32 %v1148_v55, %v1134_v14 }
 0x220   :  { %v1130_v9 = vmax.f32 %v1333_v2, 0.0  ;;  %v1335_v10 = vadd.f32 %v1044_v7, %v1669_v60 }
 0x221   :  { %v1152_v11 = vmul.f32 %v1140_v63, %v1129_v5  ;;  %v1132_v12 = vmax.f32 %v1334_v6, 0.0 }
 0x222   :  { %v1153_v16 = vmul.f32 %v1144_v3, %v1130_v9  ;;  %v1133_v58 = vmax.f32 %v1335_v10, 0.0 }
 0x223   :  { %v1155_v17 = vmul.f32 %v1140_v63, %v1132_v12 }
 0x224   :  { %v1156_v18 = vmul.f32 %v1144_v3, %v1133_v58  ;;  %v1158_v19 = vadd.f32 %v1153_v16, %v1152_v11 }
 0x226   :  { %v1159_v21 = vadd.f32 %v1158_v19, %v1154_v15  ;;  %v1162_v59 = vadd.f32 %v1156_v18, %v1155_v17 }
 0x228   :  { %1160 = vadd.xlane.f32.xlu0 %v1159_v21  ;;  %v1163_v23 = vadd.f32 %v1162_v59, %v1157_v22 }
 0x22c   :  { %1164 = vadd.xlane.f32.xlu0 %v1163_v23 }
 0x2b5   :  { %v1161_v60 = vpop.xlane.xlu0 %1160 }
 0x2b6   :  { %1167 = vst.msk [vmem:[%s1704_s7] sm:$0xff] %vm1166_vm4, %v1161_v60 }
 0x2b9   :  { %v1165_v13 = vpop.xlane.xlu0 %1164 }
 0x2ba   :  { %1168 = vst.msk [vmem:[%s1704_s7 + $0x8] sm:$0xff] %vm1166_vm4, %v1165_v13 }
 0x2bb   :  { %1173 = vsyncpa [#allocation3], 1 }
 0x2bc   :  { %1174 = vsyncpa [#allocation5], 1 }

</bundles_post_ra>
